<compile_context>
chip_gen: v7x
topology: tpu7x:2x2x1
jax: 0.10.0
libtpu: 0.0.40
codegen_flags: <defaults>
</compile_context>

<pallas_src>
import functools

import jax
import jax.numpy as jnp
from jax import lax
from jax.experimental import pallas as pl
from jax.experimental.pallas import tpu as pltpu


def _sublane_granularity(dtype):
    itemsize = jnp.dtype(dtype).itemsize
    return max(8, 8 * (4 // itemsize))  # 8 for f32, 16 for bf16, 32 for int8


def _partial_stats_kernel(emb_ref, clus_ref,
                          sum_emb_ref, counts_ref, sum_sq_ref,
                          *, n_valid, rows_per_core, padded):
    c = pl.program_id(0)   # core-split axis ("parallel")
    i = pl.program_id(1)   # row-tile axis ("arbitrary" reduction)

    @pl.when(i == 0)
    def _():
        sum_emb_ref[...] = jnp.zeros_like(sum_emb_ref)
        counts_ref[...] = jnp.zeros_like(counts_ref)
        sum_sq_ref[...] = jnp.zeros_like(sum_sq_ref)

    emb = emb_ref[...]                        # (tile_n, D), native dtype
    clus = clus_ref[...]                      # (tile_n, K), native dtype
    tn, K = clus.shape

    # First-occurrence argmax -> one-hot predicate (matches torch.max ties).
    max_val = jnp.max(clus, axis=-1, keepdims=True)               # (tn, 1)
    col = lax.broadcasted_iota(jnp.int32, (tn, K), 1)              # (tn, K)
    idx = jnp.min(jnp.where(clus == max_val, col, K),
                  axis=-1, keepdims=True)                          # (tn, 1)
    hit = col == idx                                               # (tn, K) bool

    if padded:  # mask out zero-padded rows (static: only emitted when needed)
        row = lax.broadcasted_iota(jnp.int32, (tn, K), 0)
        global_row = c * rows_per_core + i * tn + row
        hit = jnp.logical_and(hit, global_row < n_valid)

    onehot_f32 = hit.astype(jnp.float32)
    onehot_mm = hit.astype(emb.dtype)         # bf16 stays native on the MXU

    emb_f32 = emb.astype(jnp.float32)
    sq = jnp.sum(emb_f32 * emb_f32, axis=-1, keepdims=True)        # (tn, 1)

    # Per-cluster embedding sums: contract over the row axis directly
    # (no materialized onehot.T), f32 accumulation on the MXU.
    sum_emb_ref[...] += lax.dot_general(
        onehot_mm, emb,
        dimension_numbers=(((0,), (0,)), ((), ())),
        preferred_element_type=jnp.float32)                        # (K, D)

    # Counts / second-moment sums as lane-dense (1, K) VPU/XLU reductions
    # (avoids two 1-lane MXU matmuls + masked single-lane stores per tile).
    counts_ref[...] += jnp.sum(onehot_f32, axis=0, keepdims=True)  # (1, K)
    sum_sq_ref[...] += jnp.sum(onehot_f32 * sq, axis=0, keepdims=True)


def cluster_var_loss(embedding, cluster_out, *, tile_n=None, num_cores=2,
                     vmem_budget_bytes=24 * 1024 * 1024):
    """embedding: (N, D), cluster_out: (N, K). Returns shape-(1,) float32."""
    N, D = embedding.shape
    N2, K = cluster_out.shape
    assert N == N2, "embedding and cluster_out must share the leading dim"

    emb_isz = jnp.dtype(embedding.dtype).itemsize
    clus_isz = jnp.dtype(cluster_out.dtype).itemsize
    gran = max(_sublane_granularity(embedding.dtype),
               _sublane_granularity(cluster_out.dtype))

    if tile_n is None:
        # Double-buffered input tiles + accumulators must fit the scoped-VMEM
        # budget (conservative 24 MiB -> safe on v5e/v6e/v7x).
        bytes_per_row = 2 * (D * emb_isz + K * clus_isz)
        acc_bytes = 2 * (K * D * 4 + 2 * K * 4) + (1 << 16)
        max_rows = max(gran, (vmem_budget_bytes - acc_bytes) // bytes_per_row)
        tile_n = int(min(2048, max_rows))
        # No point tiling finer than one (rounded-up) per-core share of N.
        per_core = -(-N // num_cores)
        per_core = -(-per_core // gran) * gran
        tile_n = max(gran, min((tile_n // gran) * gran, per_core))
    assert tile_n % gran == 0, (
        f"tile_n must be a multiple of {gran} for dtypes "
        f"{embedding.dtype}/{cluster_out.dtype}")

    total_tiles = -(-N // tile_n)
    tiles_per_core = -(-total_tiles // num_cores)
    rows_per_core = tiles_per_core * tile_n
    n_pad = num_cores * rows_per_core
    padded = n_pad != N
    if padded:
        embedding = jnp.pad(embedding, ((0, n_pad - N), (0, 0)))
        cluster_out = jnp.pad(cluster_out, ((0, n_pad - N), (0, 0)))

    kernel = functools.partial(
        _partial_stats_kernel, n_valid=N,
        rows_per_core=rows_per_core, padded=padded)

    flops = 2 * N * K * D + 2 * N * D + 6 * N * K
    bytes_accessed = (N * D * emb_isz + N * K * clus_isz
                      + num_cores * (K * D + 2 * K) * 4)

    sum_emb, counts, sum_sq = pl.pallas_call(
        kernel,
        out_shape=(
            jax.ShapeDtypeStruct((num_cores, K, D), jnp.float32),
            jax.ShapeDtypeStruct((num_cores, 1, K), jnp.float32),
            jax.ShapeDtypeStruct((num_cores, 1, K), jnp.float32),
        ),
        grid_spec=pltpu.PrefetchScalarGridSpec(
            num_scalar_prefetch=0,
            grid=(num_cores, tiles_per_core),
            in_specs=[
                pl.BlockSpec((tile_n, D),
                             lambda c, i: (c * tiles_per_core + i, 0)),
                pl.BlockSpec((tile_n, K),
                             lambda c, i: (c * tiles_per_core + i, 0)),
            ],
            out_specs=(
                pl.BlockSpec((None, K, D), lambda c, i: (c, 0, 0)),
                pl.BlockSpec((None, 1, K), lambda c, i: (c, 0, 0)),
                pl.BlockSpec((None, 1, K), lambda c, i: (c, 0, 0)),
            ),
        ),
        compiler_params=pltpu.CompilerParams(
            dimension_semantics=("parallel", "arbitrary"),
            vmem_limit_bytes=32 * 1024 * 1024),
        cost_estimate=pl.CostEstimate(
            flops=flops, transcendentals=0, bytes_accessed=bytes_accessed),
    )(embedding, cluster_out)

    # Tiny (K, D)-sized epilogue: combine per-core partials and finalize.
    sum_emb = jnp.sum(sum_emb, axis=0)                 # (K, D)
    counts = jnp.sum(counts, axis=0)[0]                # (K,)
    sum_sq = jnp.sum(sum_sq, axis=0)[0]                # (K,)

    denom = jnp.maximum(counts, 1.0)                   # clamp(min=1)
    weighted = counts / jnp.maximum(jnp.sum(counts), 1e-12)   # F.normalize p=1
    second_mom = sum_sq / denom
    mean_norm_sq = jnp.sum(jnp.square(sum_emb), axis=-1) / (denom * denom)
    loss = jnp.sum(weighted * (second_mom - mean_norm_sq))
    return loss.reshape(1).astype(jnp.float32)


def _reference(embedding, cluster_out):
    labels = jnp.argmax(cluster_out, axis=-1)
    K = cluster_out.shape[-1]
    onehot = jax.nn.one_hot(labels, K, dtype=jnp.float32)
    counts = onehot.sum(axis=0)
    denom = jnp.maximum(counts, 1.0)[:, None]
    mean = onehot.T @ embedding.astype(jnp.float32) / denom
    sq = jnp.square(embedding.astype(jnp.float32)).sum(axis=-1, keepdims=True)
    second = onehot.T @ sq / denom
    weighted = counts / jnp.maximum(counts.sum(), 1e-12)
    return weighted @ (second - jnp.square(mean).sum(axis=-1, keepdims=True))


if __name__ == "__main__":
    key = jax.random.PRNGKey(0)
    k1, k2, k3, k4 = jax.random.split(key, 4)

    # Small primary case (matches module: embedding [N, D], logits [N, K]).
    N, D, K = 64, 32, 8
    embedding = jax.random.normal(k1, (N, D), dtype=jnp.float32)
    cluster_out = jax.random.normal(k2, (N, K), dtype=jnp.float32)

    result = cluster_var_loss(embedding, cluster_out)
    jax.block_until_ready(result)
    assert result.shape == (1,)
    ref = _reference(embedding, cluster_out)
    if not jnp.allclose(result, ref, rtol=1e-5, atol=1e-5):
        raise AssertionError(f"mismatch: kernel={result} ref={ref}")

    # Ragged N exercising padding/masking + multi-tile + core split.
    N2_, D2_, K2_ = 1000, 32, 8
    emb2 = jax.random.normal(k3, (N2_, D2_), dtype=jnp.float32)
    clus2 = jax.random.normal(k4, (N2_, K2_), dtype=jnp.float32)
    result2 = cluster_var_loss(emb2, clus2)
    jax.block_until_ready(result2)
    ref2 = _reference(emb2, clus2)
    if not jnp.allclose(result2, ref2, rtol=1e-4, atol=1e-4):
        raise AssertionError(f"mismatch (ragged): kernel={result2} ref={ref2}")

    print("KERNEL_OK")
</pallas_src>

<mosaic_0001>
module attributes {stable_mosaic.version = 11 : i64} {
  func.func @_partial_stats_kernel(%arg0: i32, %arg1: i32, %arg2: memref<32x32xf32, #tpu.memory_space<vmem>>, %arg3: memref<32x8xf32, #tpu.memory_space<vmem>>, %arg4: memref<1x8x32xf32, #tpu.memory_space<vmem>>, %arg5: memref<1x1x8xf32, #tpu.memory_space<vmem>>, %arg6: memref<1x1x8xf32, #tpu.memory_space<vmem>>) attributes {dimension_semantics = [#tpu.dimension_semantics<parallel>, #tpu.dimension_semantics<arbitrary>], iteration_bounds = array<i64: 2, 1>, scalar_prefetch = 0 : i64, scratch_operands = 0 : i64, tpu.core_type = #tpu.core_type<tc>, window_params = [{transform_indices = @transform_0, window_bounds = array<i64: 32, 32>}, {transform_indices = @transform_1, window_bounds = array<i64: 32, 8>}, {transform_indices = @transform_2, window_bounds = array<i64: 1, 8, 32>}, {transform_indices = @transform_3, window_bounds = array<i64: 1, 1, 8>}, {transform_indices = @transform_4, window_bounds = array<i64: 1, 1, 8>}]} {
    %c0_i32 = arith.constant 0 : i32
    %0 = arith.cmpi eq, %arg1, %c0_i32 : i32
    %1 = arith.extui %0 : i1 to i32
    %c0_i32_0 = arith.constant 0 : i32
    %2 = arith.cmpi ne, %1, %c0_i32_0 : i32
    scf.if %2 {
      %cst_27 = arith.constant 0.000000e+00 : f32
      %48 = vector.broadcast %cst_27 : f32 to vector<8x32xf32>
      %c0_28 = arith.constant 0 : index
      %c0_29 = arith.constant 0 : index
      %c0_30 = arith.constant 0 : index
      %49 = vector.load %arg4[%c0_28, %c0_29, %c0_30] : memref<1x8x32xf32, #tpu.memory_space<vmem>>, vector<1x8x32xf32>
      %50 = vector.shape_cast %49 : vector<1x8x32xf32> to vector<8x32xf32>
      %51 = vector.shape_cast %48 : vector<8x32xf32> to vector<1x8x32xf32>
      tpu.vector_store %arg4[%c0_28, %c0_29, %c0_30], %51 {strides = array<i32>} : memref<1x8x32xf32, #tpu.memory_space<vmem>>, vector<1x8x32xf32>,
      %cst_31 = arith.constant 0.000000e+00 : f32
      %52 = vector.broadcast %cst_31 : f32 to vector<1x8xf32>
      %c0_32 = arith.constant 0 : index
      %c0_33 = arith.constant 0 : index
      %c0_34 = arith.constant 0 : index
      %53 = vector.load %arg5[%c0_32, %c0_33, %c0_34] : memref<1x1x8xf32, #tpu.memory_space<vmem>>, vector<1x1x8xf32>
      %54 = vector.shape_cast %53 : vector<1x1x8xf32> to vector<1x8xf32>
      %55 = vector.shape_cast %52 : vector<1x8xf32> to vector<1x1x8xf32>
      tpu.vector_store %arg5[%c0_32, %c0_33, %c0_34], %55 {strides = array<i32>} : memref<1x1x8xf32, #tpu.memory_space<vmem>>, vector<1x1x8xf32>,
      %cst_35 = arith.constant 0.000000e+00 : f32
      %56 = vector.broadcast %cst_35 : f32 to vector<1x8xf32>
      %c0_36 = arith.constant 0 : index
      %c0_37 = arith.constant 0 : index
      %c0_38 = arith.constant 0 : index
      %57 = vector.load %arg6[%c0_36, %c0_37, %c0_38] : memref<1x1x8xf32, #tpu.memory_space<vmem>>, vector<1x1x8xf32>
      %58 = vector.shape_cast %57 : vector<1x1x8xf32> to vector<1x8xf32>
      %59 = vector.shape_cast %56 : vector<1x8xf32> to vector<1x1x8xf32>
      tpu.vector_store %arg6[%c0_36, %c0_37, %c0_38], %59 {strides = array<i32>} : memref<1x1x8xf32, #tpu.memory_space<vmem>>, vector<1x1x8xf32>,
    } else {
    }
    %c0 = arith.constant 0 : index
    %c0_1 = arith.constant 0 : index
    %3 = vector.load %arg2[%c0, %c0_1] : memref<32x32xf32, #tpu.memory_space<vmem>>, vector<32x32xf32>
    %c0_2 = arith.constant 0 : index
    %c0_3 = arith.constant 0 : index
    %4 = vector.load %arg3[%c0_2, %c0_3] : memref<32x8xf32, #tpu.memory_space<vmem>>, vector<32x8xf32>
    %cst = arith.constant dense<0xFF800000> : vector<32xf32>
    %5 = vector.multi_reduction <maximumf>, %4, %cst [1] : vector<32x8xf32> to vector<32xf32>
    %6 = vector.shape_cast %5 : vector<32xf32> to vector<32x1xf32>
    %7 = tpu.iota {dimensions = array<i32: 1>} : vector<32x8xi32>
    %8 = vector.broadcast %6 : vector<32x1xf32> to vector<32x8xf32>
    %9 = arith.cmpf oeq, %4, %8 : vector<32x8xf32>
    %c8_i32 = arith.constant 8 : i32
    %10 = vector.broadcast %c8_i32 : i32 to vector<32x8xi32>
    %11 = arith.select %9, %7, %10 : vector<32x8xi1>, vector<32x8xi32>
    %cst_4 = arith.constant dense<2147483647> : vector<32xi32>
    %12 = vector.multi_reduction <minsi>, %11, %cst_4 [1] : vector<32x8xi32> to vector<32xi32>
    %13 = vector.shape_cast %12 : vector<32xi32> to vector<32x1xi32>
    %14 = vector.broadcast %13 : vector<32x1xi32> to vector<32x8xi32>
    %15 = arith.cmpi eq, %7, %14 : vector<32x8xi32>
    %16 = arith.extui %15 : vector<32x8xi1> to vector<32x8xi32>
    %17 = arith.sitofp %16 : vector<32x8xi32> to vector<32x8xf32>
    %18 = arith.extui %15 : vector<32x8xi1> to vector<32x8xi32>
    %19 = arith.sitofp %18 : vector<32x8xi32> to vector<32x8xf32>
    %20 = arith.mulf %3, %3 : vector<32x32xf32>
    %cst_5 = arith.constant dense<0.000000e+00> : vector<32xf32>
    %21 = vector.multi_reduction <add>, %20, %cst_5 [1] : vector<32x32xf32> to vector<32xf32>
    %22 = vector.shape_cast %21 : vector<32xf32> to vector<32x1xf32>
    %c0_6 = arith.constant 0 : index
    %c0_7 = arith.constant 0 : index
    %c0_8 = arith.constant 0 : index
    %23 = vector.load %arg4[%c0_6, %c0_7, %c0_8] : memref<1x8x32xf32, #tpu.memory_space<vmem>>, vector<1x8x32xf32>
    %24 = vector.shape_cast %23 : vector<1x8x32xf32> to vector<8x32xf32>
    %cst_9 = arith.constant dense<0.000000e+00> : vector<8x32xf32>
    %25 = tpu.matmul %19, %3, %cst_9 {dimension_numbers = #tpu.dot_dimension_numbers<[0], [0], [1], [1], [0, 1, 1, 1], [], []>} : vector<32x8xf32>, vector<32x32xf32>, vector<8x32xf32> -> vector<8x32xf32>
    %26 = arith.addf %24, %25 : vector<8x32xf32>
    %c0_10 = arith.constant 0 : index
    %c0_11 = arith.constant 0 : index
    %c0_12 = arith.constant 0 : index
    %27 = vector.load %arg4[%c0_10, %c0_11, %c0_12] : memref<1x8x32xf32, #tpu.memory_space<vmem>>, vector<1x8x32xf32>
    %28 = vector.shape_cast %27 : vector<1x8x32xf32> to vector<8x32xf32>
    %29 = vector.shape_cast %26 : vector<8x32xf32> to vector<1x8x32xf32>
    tpu.vector_store %arg4[%c0_10, %c0_11, %c0_12], %29 {strides = array<i32>} : memref<1x8x32xf32, #tpu.memory_space<vmem>>, vector<1x8x32xf32>,
    %c0_13 = arith.constant 0 : index
    %c0_14 = arith.constant 0 : index
    %c0_15 = arith.constant 0 : index
    %30 = vector.load %arg5[%c0_13, %c0_14, %c0_15] : memref<1x1x8xf32, #tpu.memory_space<vmem>>, vector<1x1x8xf32>
    %31 = vector.shape_cast %30 : vector<1x1x8xf32> to vector<1x8xf32>
    %cst_16 = arith.constant dense<0.000000e+00> : vector<8xf32>
    %32 = vector.multi_reduction <add>, %17, %cst_16 [0] : vector<32x8xf32> to vector<8xf32>
    %33 = vector.shape_cast %32 : vector<8xf32> to vector<1x8xf32>
    %34 = arith.addf %31, %33 : vector<1x8xf32>
    %c0_17 = arith.constant 0 : index
    %c0_18 = arith.constant 0 : index
    %c0_19 = arith.constant 0 : index
    %35 = vector.load %arg5[%c0_17, %c0_18, %c0_19] : memref<1x1x8xf32, #tpu.memory_space<vmem>>, vector<1x1x8xf32>
    %36 = vector.shape_cast %35 : vector<1x1x8xf32> to vector<1x8xf32>
    %37 = vector.shape_cast %34 : vector<1x8xf32> to vector<1x1x8xf32>
    tpu.vector_store %arg5[%c0_17, %c0_18, %c0_19], %37 {strides = array<i32>} : memref<1x1x8xf32, #tpu.memory_space<vmem>>, vector<1x1x8xf32>,
    %c0_20 = arith.constant 0 : index
    %c0_21 = arith.constant 0 : index
    %c0_22 = arith.constant 0 : index
    %38 = vector.load %arg6[%c0_20, %c0_21, %c0_22] : memref<1x1x8xf32, #tpu.memory_space<vmem>>, vector<1x1x8xf32>
    %39 = vector.shape_cast %38 : vector<1x1x8xf32> to vector<1x8xf32>
    %40 = vector.broadcast %22 : vector<32x1xf32> to vector<32x8xf32>
    %41 = arith.mulf %17, %40 : vector<32x8xf32>
    %cst_23 = arith.constant dense<0.000000e+00> : vector<8xf32>
    %42 = vector.multi_reduction <add>, %41, %cst_23 [0] : vector<32x8xf32> to vector<8xf32>
    %43 = vector.shape_cast %42 : vector<8xf32> to vector<1x8xf32>
    %44 = arith.addf %39, %43 : vector<1x8xf32>
    %c0_24 = arith.constant 0 : index
    %c0_25 = arith.constant 0 : index
    %c0_26 = arith.constant 0 : index
    %45 = vector.load %arg6[%c0_24, %c0_25, %c0_26] : memref<1x1x8xf32, #tpu.memory_space<vmem>>, vector<1x1x8xf32>
    %46 = vector.shape_cast %45 : vector<1x1x8xf32> to vector<1x8xf32>
    %47 = vector.shape_cast %44 : vector<1x8xf32> to vector<1x1x8xf32>
    tpu.vector_store %arg6[%c0_24, %c0_25, %c0_26], %47 {strides = array<i32>} : memref<1x1x8xf32, #tpu.memory_space<vmem>>, vector<1x1x8xf32>,
    return
  }
  func.func @transform_0(%arg0: i32, %arg1: i32) -> (i32, i32) {
    %c1_i32 = arith.constant 1 : i32
    %0 = arith.muli %arg0, %c1_i32 : i32
    %1 = arith.addi %0, %arg1 : i32
    %c0_i32 = arith.constant 0 : i32
    %c0_i32_0 = arith.constant 0 : i32
    return %1, %c0_i32 : i32, i32
  }
  func.func @transform_1(%arg0: i32, %arg1: i32) -> (i32, i32) {
    %c1_i32 = arith.constant 1 : i32
    %0 = arith.muli %arg0, %c1_i32 : i32
    %1 = arith.addi %0, %arg1 : i32
    %c0_i32 = arith.constant 0 : i32
    %c0_i32_0 = arith.constant 0 : i32
    return %1, %c0_i32 : i32, i32
  }
  func.func @transform_2(%arg0: i32, %arg1: i32) -> (i32, i32, i32) {
    %c0_i32 = arith.constant 0 : i32
    %c0_i32_0 = arith.constant 0 : i32
    %c0_i32_1 = arith.constant 0 : i32
    return %arg0, %c0_i32, %c0_i32_0 : i32, i32, i32
  }
  func.func @transform_3(%arg0: i32, %arg1: i32) -> (i32, i32, i32) {
    %c0_i32 = arith.constant 0 : i32
    %c0_i32_0 = arith.constant 0 : i32
    %c0_i32_1 = arith.constant 0 : i32
    return %arg0, %c0_i32, %c0_i32_0 : i32, i32, i32
  }
  func.func @transform_4(%arg0: i32, %arg1: i32) -> (i32, i32, i32) {
    %c0_i32 = arith.constant 0 : i32
    %c0_i32_0 = arith.constant 0 : i32
    %c0_i32_1 = arith.constant 0 : i32
    return %arg0, %c0_i32, %c0_i32_0 : i32, i32, i32
  }
}

</mosaic_0001>

<bundles_post_ra>
// kernel: tpu_custom_call.1
= control target key start
LH: loop header
LB: loop body
LE: loop exit
PB: predicated region body
PF: predicated region fallthrough
CT: control target
= control target key end

     0   :  { %10 = vsyncpa [#allocation3], 0  ;;  %s1244_s0 = inlined_call_operand.vmem [shape: f32[64,32], index: 0, kind: input, shape index: {}]   ;;  %s1245_s1 = inlined_call_operand.vmem [shape: f32[64,8], index: 1, kind: input, shape index: {}]   ;;  %s1246_s2 = inlined_call_operand.hbm [shape: f32[2,8,32], index: 2, kind: output, shape index: {0}]   ;;  %s1247_s3 = inlined_call_operand.hbm [shape: f32[2,1,8], index: 3, kind: output, shape index: {1}]   ;;  %s1248_s4 = inlined_call_operand.hbm [shape: f32[2,1,8], index: 4, kind: output, shape index: {2}]  }
   0x1   :  { %12 = vsyncpa [#allocation3 + $0x1], 0 }
   0x2   :  { %13 = vsyncpa [#allocation5], 0 }
   0x3   :  { %15 = vsyncpa [#allocation5 + $0x1], 0  ;;  %s998_s15 = smov 0   ;;  %s1000_s16 = smov 0  }
   0x4   :  { %s1002_s17 = smov 0   ;;  %s1004_s18 = smov 0  }
   0x5   :  { %s1006_s19 = smov 0   ;;  %s1008_s20 = smov 0  }
   0x6 LB: > { %s716_s21 = sadd.s32 4294967295, %s965_s20   ;;  %s1249_s22 = sadd.s32 4294967294, %s965_s20   ;;  %s965_s20 = sphi %s1008_s20, %s21_s20   ;;  %s961_s19 = sphi %s1006_s19, %s1257_s19   ;;  %s957_s18 = sphi %s1004_s18, %s1256_s18   ;;  %s953_s17 = sphi %s1002_s17, %s1255_s17   ;;  %s949_s16 = sphi %s1000_s16, %s1254_s16   ;;  %s945_s15 = sphi %s998_s15, %s1253_s15  }
   0x7   : > { %s33_s23 = sadd.s32 1, %s961_s19  ;;  %s96_s24 = sadd.s32 1, %s953_s17 }
   0x8   : > { %p35_p0 = scmp.ge.s32.totalorder %s33_s23, 2  ;;  %p106_p1 = scmp.ne.s32.totalorder %s953_s17, %s949_s16 }
   0x9   : > { %p107_p2 = scmp.eq.s32.totalorder %s716_s21, 1  ;;  %p112_p3 = scmp.ne.s32.totalorder %s949_s16, %s945_s15 }
   0xa   : > { %s1259_s23 = smov (%p35_p0, %s33_s23), 0  ;;  %p113_p5 = scmp.eq.s32.totalorder %s1249_s22, 1 }
   0xb   : > { %p1040_p4 = por %p107_p2, %p106_p1  ;;  %s93_s26 = ssub.s32 %s961_s19, %s1259_s23 }
   0xc   : > { %p720_p6 = scmp.ge.s32.totalorder %s965_s20, 1  ;;  %p94_p7 = scmp.eq.s32.totalorder %s93_s26, 0 }
   0xd   : > { %p1049_p8 = por %p113_p5, %p112_p3  ;;  %p205_p9 = scmp.lt.s32.totalorder %s965_s20, 3 }
   0xe   : > { %s1055_s28 = scalar_select %p94_p7, %s953_s17, %s96_s24  }
   0xf   : > { %p206_p10 = pnand %p720_p6, %p205_p9 }
  0x10   : > { %s722_s29 = sshll.u32 (!%p206_p10), %s957_s18, 2  ;;  %vm279_vm0 = vcmask (!%p206_p10), 64512   ;;  %v292_v8 = vlaneseq (!%p206_p10)  ;;  %vm266_vm9 = vcmask (!%p206_p10), 261120   ;;  %s1090_s11 = sand.u32 (!%p206_p10), 1, %s949_s16   ;;  %vm268_vm10 = vcmask (!%p206_p10), 57344  }
  0x11   : > { %209 = sbr.rel (%p206_p10) target bundleno = 827 (0x33b), region = 28  ;;  %p248_p11 = scmp.lt.s32.totalorder (!%p206_p10), %s722_s29, 7  ;;  %v967_v58 = vmov (!%p206_p10), 0.0   ;;  %v968_v60 = vmov (!%p206_p10), 0.0|0.0   ;;  %vm969_vm11 = vmmov (!%p206_p10), 0  }
  0x12   : > { %v1070_v9 = vand.u32 (!%p206_p10), 127, %v292_v8  ;;  %s1093_s12 = scalar_lea.vmem (!%p206_p10), [#allocation4], %s1090_s11  ;;  %s1098_s13 = scalar_lea.vmem (!%p206_p10), [#allocation6], %s1090_s11  ;;  %753 = vmatprep.subr.bf16.mxu0 (!%p206_p10), %v968_v60  ;;  %750 = vmatprep.mubr.msk.f32.mxu0 (!%p206_p10), %vm969_vm11, %v967_v58 }
  0x13   : > { %269 = vst.msk [vmem:[%s1093_s12] sm:$0x1] (!%p206_p10), %vm268_vm10, %v967_v58  ;;  %270 = vst.msk [vmem:[%s1098_s13] sm:$0x1] (!%p206_p10), %vm268_vm10, %v967_v58  ;;  %s721_s14 = sshll.u32 (!%p206_p10), %s1090_s11, 3  ;;  %s1128_s26 = sand.u32 (!%p206_p10), 1, %s716_s21  }
  0x14   : > { %s1106_s24 = scalar_lea.vmem (!%p206_p10), [#allocation2], %s721_s14  ;;  %s542_s8 = scalar_lea.sflag (!%p206_p10), [#allocation5], %s1128_s26 }
  0x15   : > { %267 = vst.msk [vmem:[%s1106_s24] sm:$0xff] (!%p206_p10), %vm266_vm9, %v967_v58 }
  0x18   : > { %s1261_s29 = smov (!%p248_p11, %s722_s29), 7 }
  0x19   : > { %s723_s30 = sshll.u32 %s1261_s29, 3  ;;  %s733_s29 = sshll.u32 %s957_s18, 4 }
  0x1a   : > { %s259_s7 = scalar_lea.vmem %s1245_s1, %s723_s30  ;;  %s251_s10 = scalar_lea.vmem %s1244_s0, %s723_s30 }
  0x1b   : > { %v275_v0 = vld [vmem:[%s259_s7] sm:$0xff]  ;;  %v277_v1 = vld [vmem:[%s259_s7 + $0x10] sm:$0xff]  ;;  %v276_v2 = vld [vmem:[%s259_s7 + $0x8] sm:$0xff]  ;;  %s1136_s6 = scalar_lea.hbm %s1247_s3, %s733_s29 }
  0x1c   : > { %v280_v3 = vsel %vm279_vm0, %v275_v0, -inf  ;;  %v286_v4 = vsel %vm279_vm0, %v277_v1, -inf  ;;  %v278_v5 = vld [vmem:[%s259_s7 + $0x18] sm:$0xff]  ;;  %v283_v6 = vsel %vm279_vm0, %v276_v2, -inf  ;;  %v271_v41 = vld [vmem:[%s251_s10] sm:$0xff]  ;;  %v272_v47 = vld [vmem:[%s251_s10 + $0x8] sm:$0xff] }
  0x1d   : > { %281 = vmax.xlane.f32.xlu0 %v280_v3  ;;  %287 = vmax.xlane.f32.xlu1 %v286_v4  ;;  %v289_v7 = vsel %vm279_vm0, %v278_v5, -inf  ;;  %v374_v46 = vmul.f32 %v271_v41, %v271_v41  ;;  %v375_v50 = vmul.f32 %v272_v47, %v272_v47  ;;  %v273_v51 = vld [vmem:[%s251_s10 + $0x10] sm:$0xff]  ;;  %v274_v54 = vld [vmem:[%s251_s10 + $0x18] sm:$0xff]  ;;  %v754_v59 = vpack.c.bf16 %v272_v47, %v271_v41  ;;  %s571_s7 = sshll.u32 %s1093_s12, 4  ;;  %s970_s10 = smov [#allocation4]   ;;  %s572_s7 = int_to_ptr.vmem [resolvable:$true] %s571_s7 }
  0x1e   : > { %v376_v53 = vmul.f32 %v273_v51, %v273_v51  ;;  %v377_v56 = vmul.f32 %v274_v54, %v274_v54  ;;  %v757_v61 = vpack.c.bf16 %v274_v54, %v273_v51  ;;  %s827_s9 = scalar_lea.vmem %s572_s7, 16  ;;  %s831_s14 = sshll.u32 %s970_s10, 4  ;;  %s832_s14 = int_to_ptr.vmem [resolvable:$false] %s831_s14 }
  0x1f   : > { %v379_v49 = vsel %vm266_vm9, %v374_v46, 0.0  ;;  %v382_v52 = vsel %vm266_vm9, %v375_v50, 0.0  ;;  %755 = vmatpush3.bf16.msra.mxu0 %v754_v59  ;;  %p828_p12 = scmp.ne.s32.totalorder %s572_s7, %s827_s9  ;;  %s833_s21 = scalar_lea.vmem %s832_s14, 32 }
  0x20   : > { %v385_v55 = vsel %vm266_vm9, %v376_v53, 0.0  ;;  %v388_v57 = vsel %vm266_vm9, %v377_v56, 0.0  ;;  %756 = vmatprep.subr.bf16.mxu0 %v968_v60  ;;  %p834_p1 = scmp.lt.s32.totalorder %s572_s7, %s832_s14  ;;  %p835_p2 = scmp.lt.s32.totalorder %s833_s21, %s827_s9 }
  0x21   : > { %284 = vmax.xlane.f32.xlu0 %v283_v6  ;;  %290 = vmax.xlane.f32.xlu1 %v289_v7  ;;  %p829_p13 = pnand %p828_p12, %p1040_p4 }
  0x22   : > { %p836_p3 = por %p835_p2, %p834_p1 }
  0x23   : > { %758 = vmatpush3.bf16.msra.mxu0 %v757_v61  ;;  %p830_p0 = pneg %p829_p13 }
  0x25   : > { %p837_p5 = pnand %p836_p3, %p830_p0 }
  0xaa   : > { %v282_v10 = vpop.xlane.xlu0 %281  ;;  %v288_v11 = vpop.xlane.xlu1 %287 }
  0xab   : > { %vm294_vm1 = vcmp.eq.f32.partialorder %v275_v0, %v282_v10  ;;  %vm296_vm2 = vcmp.eq.f32.partialorder %v277_v1, %v288_v11 }
  0xac   : > { %v298_v12 = vsel %vm294_vm1, %v1070_v9, 8  ;;  %v300_v13 = vsel %vm296_vm2, %v1070_v9, 8 }
  0xad   : > { %v302_v14 = vsel %vm279_vm0, %v298_v12, 2147483647  ;;  %v332_v15 = vsel %vm279_vm0, %v300_v13, 2147483647 }
  0xae   : > { %v285_v16 = vpop.xlane.xlu0 %284  ;;  %v291_v17 = vpop.xlane.xlu1 %290  ;;  %v304_v18 = vshra.s32 %v302_v14, 16  ;;  %v334_v19 = vshra.s32 %v332_v15, 16  ;;  %v303_v30 = vand.u32 65535, %v302_v14  ;;  %v333_v34 = vand.u32 65535, %v332_v15 }
  0xaf   : > { %vm295_vm3 = vcmp.eq.f32.partialorder %v276_v2, %v285_v16  ;;  %vm297_vm4 = vcmp.eq.f32.partialorder %v278_v5, %v291_v17 }
  0xb0   : > { %v299_v20 = vsel %vm295_vm3, %v1070_v9, 8  ;;  %v301_v21 = vsel %vm297_vm4, %v1070_v9, 8  ;;  %v306_v22 = vcvt.s32.f32 %v304_v18  ;;  %v336_v25 = vcvt.s32.f32 %v334_v19 }
  0xb1   : > { %v317_v23 = vsel %vm279_vm0, %v299_v20, 2147483647  ;;  %v347_v24 = vsel %vm279_vm0, %v301_v21, 2147483647  ;;  %v305_v32 = vcvt.s32.f32 %v303_v30  ;;  %v335_v39 = vcvt.s32.f32 %v333_v34 }
  0xb2   : > { %307 = vmin.xlane.f32.xlu0 %v306_v22  ;;  %v319_v26 = vshra.s32 %v317_v23, 16  ;;  %v349_v27 = vshra.s32 %v347_v24, 16  ;;  %v318_v33 = vand.u32 65535, %v317_v23  ;;  %v348_v40 = vand.u32 65535, %v347_v24 }
  0xb4   : > { %v321_v28 = vcvt.s32.f32 %v319_v26  ;;  %v351_v29 = vcvt.s32.f32 %v349_v27  ;;  %v320_v38 = vcvt.s32.f32 %v318_v33  ;;  %v350_v45 = vcvt.s32.f32 %v348_v40 }
  0xb6   : > { %337 = vmin.xlane.f32.xlu0 %v336_v25  ;;  %322 = vmin.xlane.f32.xlu1 %v321_v28 }
  0xba   : > { %352 = vmin.xlane.f32.xlu1 %v351_v29 }
 0x13f   : > { %v308_v31 = vpop.xlane.xlu0 %307 }
 0x140   : > { %vm309_vm5 = vcmp.eq.f32.partialorder %v306_v22, %v308_v31  ;;  %v314_v62 = vcvt.f32.s32 %v308_v31 }
 0x141   : > { %v310_v35 = vsel %vm309_vm5, %v305_v32, inf }
 0x142   : > { %311 = vmin.xlane.f32.xlu0 %v310_v35  ;;  %v315_v2 = vshll.u32 %v314_v62, 16 }
 0x143   : > { %v323_v36 = vpop.xlane.xlu1 %322  ;;  %v338_v37 = vpop.xlane.xlu0 %337 }
 0x144   : > { %vm324_vm6 = vcmp.eq.f32.partialorder %v321_v28, %v323_v36  ;;  %vm339_vm7 = vcmp.eq.f32.partialorder %v336_v25, %v338_v37  ;;  %v329_v63 = vcvt.f32.s32 %v323_v36  ;;  %v344_v0 = vcvt.f32.s32 %v338_v37 }
 0x145   : > { %v325_v42 = vsel %vm324_vm6, %v320_v38, inf  ;;  %v340_v43 = vsel %vm339_vm7, %v335_v39, inf }
 0x146   : > { %326 = vmin.xlane.f32.xlu1 %v325_v42  ;;  %341 = vmin.xlane.f32.xlu0 %v340_v43  ;;  %v330_v5 = vshll.u32 %v329_v63, 16  ;;  %v345_v6 = vshll.u32 %v344_v0, 16 }
 0x147   : > { %v353_v44 = vpop.xlane.xlu1 %352 }
 0x148   : > { %vm354_vm8 = vcmp.eq.f32.partialorder %v351_v29, %v353_v44  ;;  %v359_v10 = vcvt.f32.s32 %v353_v44 }
 0x149   : > { %v355_v48 = vsel %vm354_vm8, %v350_v45, inf }
 0x14a   : > { %356 = vmin.xlane.f32.xlu1 %v355_v48  ;;  %v360_v17 = vshll.u32 %v359_v10, 16  ;;  %v499_v48 = vld [vmem:[%s1093_s12] sm:$0x1] }
 0x14e   : > { %380 = vadd.xlane.f32.xlu1 %v379_v49 }
 0x152   : > { %383 = vadd.xlane.f32.xlu1 %v382_v52 }
 0x156   : > { %386 = vadd.xlane.f32.xlu1 %v385_v55 }
 0x15a   : > { %389 = vadd.xlane.f32.xlu1 %v388_v57  ;;  %v516_v57 = vld [vmem:[%s1098_s13] sm:$0x1] }
 0x1cf   : > { %v312_v1 = vpop.xlane.xlu0 %311 }
 0x1d0   : > { %v313_v3 = vcvt.f32.s32 %v312_v1 }
 0x1d2   : > { %v316_v4 = vadd.s32 %v315_v2, %v313_v3 }
 0x1d3   : > { %v327_v7 = vpop.xlane.xlu1 %326  ;;  %v342_v8 = vpop.xlane.xlu0 %341 }
 0x1d4   : > { %v328_v11 = vcvt.f32.s32 %v327_v7  ;;  %v343_v12 = vcvt.f32.s32 %v342_v8  ;;  %vm362_vm12 = vcmp.eq.s32.totalorder %v1070_v9, %v316_v4 }
 0x1d5   : > { %v726_v13 = vsel %vm362_vm12, 1.0, %v967_v58 }
 0x1d6   : > { %v331_v14 = vadd.s32 %v330_v5, %v328_v11  ;;  %v346_v15 = vadd.s32 %v345_v6, %v343_v12  ;;  %392 = vxpose.xlu0.b32.start [1/4] (short) (narrow) %v726_v13, 8  ;;  %v500_v21 = vsel %vm279_vm0, %v726_v13, 0.0 }
 0x1d7   : > { %v357_v16 = vpop.xlane.xlu1 %356 }
 0x1d8   : > { %v358_v18 = vcvt.f32.s32 %v357_v16  ;;  %vm363_vm13 = vcmp.eq.s32.totalorder %v1070_v9, %v331_v14  ;;  %vm364_vm14 = vcmp.eq.s32.totalorder %v1070_v9, %v346_v15 }
 0x1d9   : > { %v727_v19 = vsel %vm363_vm13, 1.0, %v967_v58  ;;  %v728_v20 = vsel %vm364_vm14, 1.0, %v967_v58 }
 0x1da   : > { %v361_v22 = vadd.s32 %v360_v17, %v358_v18  ;;  %v501_v23 = vsel %vm279_vm0, %v727_v19, 0.0  ;;  %393 = vxpose.xlu0.b32.cont [2/4] (short) (narrow) %v727_v19, 8  ;;  %v503_v26 = vsel %vm279_vm0, %v728_v20, 0.0 }
 0x1db   : > { %v502_v24 = vadd.f32 %v501_v23, %v500_v21  ;;  %v381_v25 = vpop.xlane.xlu1 %380 }
 0x1dc   : > { %vm365_vm15 = vcmp.eq.s32.totalorder %v1070_v9, %v361_v22  ;;  %v517_v29 = vmul.f32 %v726_v13, %v381_v25 }
 0x1dd   : > { %v504_v27 = vadd.f32 %v503_v26, %v502_v24  ;;  %v729_v28 = vsel %vm365_vm15, 1.0, %v967_v58 }
 0x1de   : > { %394 = vxpose.xlu0.b32.cont [3/4] (short) (narrow) %v728_v20, 8  ;;  %v505_v30 = vsel %vm279_vm0, %v729_v28, 0.0  ;;  %v521_v35 = vsel %vm279_vm0, %v517_v29, 0.0 }
 0x1df   : > { %v384_v31 = vpop.xlane.xlu1 %383  ;;  %v506_v32 = vadd.f32 %v505_v30, %v504_v27 }
 0x1e0   : > { %v518_v33 = vmul.f32 %v727_v19, %v384_v31 }
 0x1e1   : > { %v507_v34 = vrot.slane %v506_v32, 4 }
 0x1e2   : > { %v522_v36 = vsel %vm279_vm0, %v518_v33, 0.0  ;;  %395 = vxpose.xlu0.b32.end [4/4] (short) (narrow) %v729_v28, 8 }
 0x1e3   : > { %v523_v37 = vadd.f32 %v522_v36, %v521_v35  ;;  %v508_v38 = vadd.f32 %v507_v34, %v506_v32  ;;  %v387_v39 = vpop.xlane.xlu1 %386 }
 0x1e4   : > { %v519_v9 = vmul.f32 %v728_v20, %v387_v39 }
 0x1e5   : > { %v509_v40 = vrot.slane %v508_v38, 2 }
 0x1e6   : > { %v524_v41 = vsel %vm279_vm0, %v519_v9, 0.0 }
 0x1e7   : > { %v510_v42 = vadd.f32 %v509_v40, %v508_v38  ;;  %v390_v43 = vpop.xlane.xlu1 %389  ;;  %v525_v46 = vadd.f32 %v524_v41, %v523_v37 }
 0x1e8   : > { %v520_v44 = vmul.f32 %v729_v28, %v390_v43 }
 0x1e9   : > { %v511_v45 = vrot.slane %v510_v42, 1 }
 0x1ea   : > { %v526_v47 = vsel %vm279_vm0, %v520_v44, 0.0 }
 0x1eb   : > { %v512_v49 = vadd.f32 %v511_v45, %v510_v42  ;;  %v527_v50 = vadd.f32 %v526_v47, %v525_v46 }
 0x1ed   : > { %v528_v51 = vrot.slane %v527_v50, 4  ;;  %v513_v52 = vadd.f32 %v512_v49, %v499_v48 }
 0x1ef   : > { %v529_v53 = vadd.f32 %v528_v51, %v527_v50  ;;  %515 = vst.msk [vmem:[%s1093_s12] sm:$0x1] %vm268_vm10, %v513_v52 }
 0x1f1   : > { %v530_v54 = vrot.slane %v529_v53, 2 }
 0x1f3   : > { %v531_v55 = vadd.f32 %v530_v54, %v529_v53 }
 0x1f5   : > { %v532_v56 = vrot.slane %v531_v55, 1 }
 0x1f7   : > { %v533_v58 = vadd.f32 %v532_v56, %v531_v55 }
 0x1f9   : > { %v534_v59 = vadd.f32 %v533_v58, %v516_v57 }
 0x1fb   : > { %535 = vst.msk [vmem:[%s1098_s13] sm:$0x1] %vm268_vm10, %v534_v59 }
 0x256   : > { %v408_v60 = vpop.trf.xlu0 }
 0x257   : > { %751 = vmatmul.mubr.msk.f32.vlgmr.msra.gmra.mrb[0].mxu0 %vm266_vm9, %v408_v60 }
 0x258   : > { %840 = shalt.err (!%p837_p5)
}
 0x259   : > { %s841_s12 = scalar_lea.hbm %s1136_s6, 16  ;;  %s845_s10 = scalar_lea.hbm %s1247_s3, 32 }
 0x25a   : > { %p842_p6 = scmp.ne.s32.totalorder %s1136_s6, %s841_s12  ;;  %p846_p10 = scmp.lt.u32.totalorder %s1136_s6, %s1247_s3 }
 0x25b   : > { %p847_p11 = scmp.lt.u32.totalorder %s845_s10, %s841_s12  ;;  %p849_p13 = scmp.lt.u32.totalorder %s841_s12, %s1136_s6 }
 0x25c   : > { %p843_p7 = pnand %p842_p6, %p1040_p4 }
 0x25d   : > { %p848_p12 = por %p847_p11, %p846_p10 }
 0x25e   : > { %p844_p9 = pneg %p843_p7 }
 0x25f   : > { %p850_p0 = por %p849_p13, %p848_p12 }
 0x261   : > { %p851_p1 = pnand %p850_p0, %p844_p9 }
 0x263   : > { %854 = shalt.err (!%p851_p1)
}
 0x264   : > { %760 = dma.vmem_to_hbm [thread:$0]  (%p1040_p4), %s572_s7, 16, %s1136_s6, %s542_s8  }
 0x265   : > { %s1164_s22 = scalar_lea.hbm %s1248_s4, %s733_s29  ;;  %s584_s30 = sshll.u32 %s1098_s13, 4  ;;  %s585_s30 = int_to_ptr.vmem [resolvable:$true] %s584_s30 }
 0x266   : > { %s855_s12 = scalar_lea.vmem %s585_s30, 16  ;;  %s971_s5 = smov [#allocation6]  }
 0x267   : > { %p856_p2 = scmp.ne.s32.totalorder %s585_s30, %s855_s12  ;;  %s859_s10 = sshll.u32 %s971_s5, 4  ;;  %s860_s10 = int_to_ptr.vmem [resolvable:$false] %s859_s10 }
 0x268   : > { %s861_s14 = scalar_lea.vmem %s860_s10, 32  ;;  %p862_p6 = scmp.lt.s32.totalorder %s585_s30, %s860_s10 }
 0x269   : > { %p857_p3 = pnand %p856_p2, %p1040_p4  ;;  %p863_p7 = scmp.lt.s32.totalorder %s861_s14, %s855_s12 }
 0x26b   : > { %p858_p5 = pneg %p857_p3  ;;  %p864_p9 = por %p863_p7, %p862_p6 }
 0x26d   : > { %p865_p10 = pnand %p864_p9, %p858_p5 }
 0x26f   : > { %868 = shalt.err (!%p865_p10)
}
 0x270   : > { %s869_s13 = scalar_lea.hbm %s1164_s22, 16  ;;  %s873_s7 = scalar_lea.hbm %s1248_s4, 32 }
 0x271   : > { %p870_p11 = scmp.ne.s32.totalorder %s1164_s22, %s869_s13  ;;  %p874_p0 = scmp.lt.u32.totalorder %s1164_s22, %s1248_s4 }
 0x272   : > { %p875_p1 = scmp.lt.u32.totalorder %s873_s7, %s869_s13  ;;  %p877_p3 = scmp.lt.u32.totalorder %s869_s13, %s1164_s22 }
 0x273   : > { %p871_p12 = pnand %p870_p11, %p1040_p4 }
 0x274   : > { %p876_p2 = por %p875_p1, %p874_p0 }
 0x275   : > { %p872_p13 = pneg %p871_p12 }
 0x276   : > { %p878_p5 = por %p877_p3, %p876_p2 }
 0x278   : > { %p879_p6 = pnand %p878_p5, %p872_p13 }
 0x27a   : > { %882 = shalt.err (!%p879_p6)
}
 0x27b   : > { %761 = dma.vmem_to_hbm [thread:$0]  (%p1040_p4), %s585_s30, 16, %s1164_s22, %s542_s8   ;;  %v391_v61 = vld [vmem:[%s1106_s24] sm:$0xff] }
 0x27c   : > { %s732_s12 = sshll.u32 %s957_s18, 7  ;;  %s558_s5 = sshll.u32 %s1106_s24, 4  ;;  %s1194_s5 = int_to_ptr.vmem [resolvable:$true] %s558_s5 }
 0x27d   : > { %s1192_s13 = scalar_lea.hbm %s1246_s2, %s732_s12  ;;  %s537_s26 = scalar_lea.sflag [#allocation3], %s1090_s11 }
 0x27e   : > { %s883_s8 = scalar_lea.vmem %s1194_s5, 128  ;;  %s972_s18 = smov [#allocation2]  }
 0x27f   : > { %p884_p7 = scmp.ne.s32.totalorder %s1194_s5, %s883_s8  ;;  %s887_s22 = sshll.u32 %s972_s18, 4  ;;  %s888_s22 = int_to_ptr.vmem [resolvable:$false] %s887_s22 }
 0x280   : > { %s889_s30 = scalar_lea.vmem %s888_s22, 256  ;;  %p890_p11 = scmp.lt.s32.totalorder %s1194_s5, %s888_s22 }
 0x281   : > { %p885_p9 = pnand %p884_p7, %p1040_p4  ;;  %p891_p12 = scmp.lt.s32.totalorder %s889_s30, %s883_s8 }
 0x283   : > { %p886_p10 = pneg %p885_p9  ;;  %p892_p13 = por %p891_p12, %p890_p11 }
 0x285   : > { %p893_p0 = pnand %p892_p13, %p886_p10 }
 0x32a   : > { %v493_v62 = vpop.f32.mrb[0].mxu0 }
 0x32b   : > { %v497_v63 = vadd.f32 %v493_v62, %v391_v61  ;;  %v752_v0 = vpop.f32.mrb[1].mxu0 }
 0x32d   : > { %498 = vst.msk [vmem:[%s1106_s24] sm:$0xff] %vm266_vm9, %v497_v63 }
 0x32e   : > { %896 = shalt.err (!%p893_p0)
}
 0x32f   : > { %s897_s11 = scalar_lea.hbm %s1192_s13, 128  ;;  %s901_s6 = scalar_lea.hbm %s1246_s2, 256 }
 0x330   : > { %p898_p1 = scmp.ne.s32.totalorder %s1192_s13, %s897_s11  ;;  %p902_p5 = scmp.lt.u32.totalorder %s1192_s13, %s1246_s2 }
 0x331   : > { %p903_p6 = scmp.lt.u32.totalorder %s901_s6, %s897_s11  ;;  %p905_p9 = scmp.lt.u32.totalorder %s897_s11, %s1192_s13 }
 0x332   : > { %p899_p2 = pnand %p898_p1, %p1040_p4 }
 0x333   : > { %p904_p7 = por %p903_p6, %p902_p5 }
 0x334   : > { %p900_p3 = pneg %p899_p2 }
 0x335   : > { %p906_p10 = por %p905_p9, %p904_p7 }
 0x337   : > { %p907_p11 = pnand %p906_p10, %p900_p3 }
 0x339   : > { %910 = shalt.err (!%p907_p11)
}
 0x33a   : > { %759 = dma.vmem_to_hbm [thread:$0]  (%p1040_p4), %s1194_s5, 128, %s1192_s13, %s537_s26  }
 0x33b PF: > { %p775_p12 = scmp.ge.s32.totalorder %s965_s20, 2  ;;  %s596_s21 = sand.u32 1, %s945_s15  }
 0x33c   : > { %s597_s12 = scalar_lea.sflag [#allocation3], %s596_s21 }
 0x33d   : > { %p766_p13 = pnand %p775_p12, %p1049_p8 }
 0x33f   : > { %936 = dma.done.wait (!%p766_p13), %s597_s12, 128  }
 0x340   : > { %938 = vsyncadd (!%p766_p13), %s597_s12, 4294967168  ;;  %s1252_s10 = sadd.s32 4294967294, %s965_s20  }
 0x341   : > { %s605_s14 = sand.u32 1, %s1252_s10  }
 0x342   : > { %s606_s8 = scalar_lea.sflag [#allocation5], %s605_s14 }
 0x343   : > { %940 = dma.done.wait (!%p766_p13), %s606_s8, 32  }
 0x344   : > { %942 = vsyncadd (!%p766_p13), %s606_s8, 4294967264  ;;  %s21_s20 = sadd.s32 1, %s965_s20   ;;  %s1253_s15 = smov %s949_s16 }
 0x345   : > { %p18_p4 = scmp.ge.s32.totalorder %s21_s20, 4   ;;  %s1254_s16 = smov %s953_s17 }
 0x346   : > { %s1255_s17 = smov %s1055_s28  ;;  %s1256_s18 = smov %s961_s19 }
 0x347   : > { %s1257_s19 = smov %s1259_s23  ;;  %20 = sbr.rel (!%p18_p4) target bundleno = 6 (0x6), region = 102 }
 0x34e   :  { %618 = vsyncpa [#allocation3], 1 }
 0x34f   :  { %620 = vsyncpa [#allocation3 + $0x1], 1 }
 0x350   :  { %621 = vsyncpa [#allocation5], 1 }
 0x351   :  { %623 = vsyncpa [#allocation5 + $0x1], 1 }

</bundles_post_ra>
